<compile_context>
chip_gen: v7x
topology: tpu7x:2x2x1
jax: 0.10.0
libtpu: 0.0.40
codegen_flags: <defaults>
</compile_context>

<pallas_src>
import functools

import jax
import jax.numpy as jnp
import numpy as np
from jax.experimental import pallas as pl
from jax.experimental.pallas import tpu as pltpu

LANES = 128       # lane width of a vreg / last-dim tile
SUBLANES = 8      # sublane count of a 32-bit vreg


def _round_up(x: int, m: int) -> int:
    return ((x + m - 1) // m) * m


def _lookup_kernel(table_ref, codes_ref, out_ref, *, n_chunks: int):
    """out[r, l] = table[codes[r, l]] (codes are flat word codes)."""
    codes = codes_ref[...]                  # [TR, 128] int32
    hi = codes >> 7                         # which 128-entry table chunk
    lo = codes & (LANES - 1)                # lane within that chunk
    result = jnp.full(codes.shape, -1, dtype=jnp.int32)   # -1 = "not found"
    for c in range(n_chunks):               # static, small: ceil(V / 128)
        # Broadcast the 128-entry chunk across sublanes and gather along lanes
        # (lowers to a lane dynamic-gather; no reduce, no O(V) one-hot).
        chunk = jnp.broadcast_to(table_ref[c:c + 1, :], codes.shape)   # [TR,128]
        cand = jnp.take_along_axis(chunk, lo, axis=-1)                 # [TR,128]
        result = jnp.where(hi == c, cand, result)
    out_ref[...] = result


def _codes_to_idx(table2d: jax.Array, codes_flat: jax.Array, n_chunks: int,
                  *, max_tile_rows: int = 512) -> jax.Array:
    """Batched table lookup on TPU: idx[i] = table[codes_flat[i]]."""
    n = int(codes_flat.shape[0])
    rows = max(-(-n // LANES), 1)
    tile_rows = min(max_tile_rows, _round_up(rows, SUBLANES))
    rows_pad = _round_up(rows, tile_rows)
    n_pad = rows_pad * LANES

    codes2d = jnp.zeros((n_pad,), jnp.int32).at[:n].set(
        codes_flat.astype(jnp.int32)).reshape(rows_pad, LANES)
    vh = table2d.shape[0]

    out = pl.pallas_call(
        functools.partial(_lookup_kernel, n_chunks=n_chunks),
        out_shape=jax.ShapeDtypeStruct((rows_pad, LANES), jnp.int32),
        grid_spec=pltpu.PrefetchScalarGridSpec(
            num_scalar_prefetch=0,
            grid=(rows_pad // tile_rows,),
            in_specs=[
                # Table: constant index_map -> DMA'd into VMEM once,
                # resident across all grid steps; sublane-dense [V/128, 128].
                pl.BlockSpec((vh, LANES), lambda i: (0, 0)),
                # Codes: lane-dense [tile_rows, 128] tiles.
                pl.BlockSpec((tile_rows, LANES), lambda i: (i, 0)),
            ],
            out_specs=pl.BlockSpec((tile_rows, LANES), lambda i: (i, 0)),
        ),
        compiler_params=pltpu.CompilerParams(
            # Single independent grid axis: let megacore / multi-TC shard it.
            dimension_semantics=("parallel",),
        ),
    )(table2d, codes2d)
    return out.reshape(-1)[:n]


class WordsToIdxPallas:
    """Pallas-backed equivalent of the PyTorch WordsToIdx module."""

    def __init__(self, word_to_idx: dict):
        self.word_to_idx = dict(word_to_idx)
        words = list(self.word_to_idx.keys())
        self._word_to_code = {w: i for i, w in enumerate(words)}
        v = max(len(words), 1)
        v_pad = _round_up(v, SUBLANES * LANES)           # sublane-dense table
        table = np.full((v_pad,), -1, dtype=np.int32)    # -1 = padding sentinel
        for w, code in self._word_to_code.items():
            table[code] = int(self.word_to_idx[w])
        self._table2d = jnp.asarray(table.reshape(v_pad // LANES, LANES))
        self._n_chunks = -(-v // LANES)                  # chunks actually used

    def __call__(self, input_):
        # ---- Python glue: flatten the nested word structure to codes. ----
        leaves = []

        def flatten(x):
            if isinstance(x, str):
                leaves.append(x)
                return ("leaf", len(leaves) - 1)
            elif isinstance(x, (list, tuple)):
                return ("node", [flatten(e) for e in x])
            else:
                raise RuntimeError(f'Unknown sentence type "{type(x)}".')

        tree = flatten(input_)
        # Unknown word -> KeyError, same as the original dict lookup.
        codes = jnp.asarray([self._word_to_code[w] for w in leaves],
                            dtype=jnp.int32)

        # ---- TPU kernel: batched code -> index gather. ----
        idx = jax.block_until_ready(
            _codes_to_idx(self._table2d, codes, self._n_chunks))
        idx_host = np.asarray(idx)

        def unflatten(node):
            kind, payload = node
            if kind == "leaf":
                return int(idx_host[payload])
            return [unflatten(e) for e in payload]

        return unflatten(tree)


if __name__ == "__main__":
    key = jax.random.PRNGKey(0)

    # Deterministic small vocabulary and word -> index mapping.
    vocab = [f"word{i:02d}" for i in range(23)]
    word_to_idx = {w: 3 * i + 1 for i, w in enumerate(vocab)}
    module = WordsToIdxPallas(word_to_idx)

    # Deterministic batch of sentences: batch=2, seq=8 words each.
    batch, seq = 2, 8
    sent_codes = np.asarray(jax.random.randint(key, (batch, seq), 0, len(vocab)))
    sentences = [[vocab[int(c)] for c in row] for row in sent_codes]

    # Forward pass through the Pallas-backed module (nested list -> nested list).
    out_nested = module(sentences)
    # Forward pass on a single word (str -> int).
    out_single = module(vocab[5])

    # Exercise the raw kernel path once more and block on the device result.
    flat_codes = jnp.asarray(
        [module._word_to_code[w] for row in sentences for w in row], jnp.int32)
    idx_dev = jax.block_until_ready(
        _codes_to_idx(module._table2d, flat_codes, module._n_chunks))

    # Reference: the original module semantics (pure Python dict lookup).
    ref_nested = [[word_to_idx[w] for w in row] for row in sentences]
    assert out_nested == ref_nested, (out_nested, ref_nested)
    assert out_single == word_to_idx[vocab[5]]
    assert np.asarray(idx_dev).reshape(batch, seq).tolist() == ref_nested

    print("KERNEL_OK")
</pallas_src>

<mosaic_0001>
module attributes {stable_mosaic.version = 11 : i64} {
  func.func @_lookup_kernel(%arg0: i32, %arg1: memref<8x128xi32, #tpu.memory_space<vmem>>, %arg2: memref<8x128xi32, #tpu.memory_space<vmem>>, %arg3: memref<8x128xi32, #tpu.memory_space<vmem>>) attributes {dimension_semantics = [#tpu.dimension_semantics<parallel>], iteration_bounds = array<i64: 1>, scalar_prefetch = 0 : i64, scratch_operands = 0 : i64, tpu.core_type = #tpu.core_type<tc>, window_params = [{pipeline_mode = #tpu.pipeline_mode<synchronous>, transform_indices = @transform_0, window_bounds = array<i64: 8, 128>}, {transform_indices = @transform_1, window_bounds = array<i64: 8, 128>}, {transform_indices = @transform_2, window_bounds = array<i64: 8, 128>}]} {
    %c0 = arith.constant 0 : index
    %c0_0 = arith.constant 0 : index
    %0 = vector.load %arg2[%c0, %c0_0] : memref<8x128xi32, #tpu.memory_space<vmem>>, vector<8x128xi32>
    %c7_i32 = arith.constant 7 : i32
    %1 = vector.broadcast %c7_i32 : i32 to vector<8x128xi32>
    %2 = arith.shrsi %0, %1 : vector<8x128xi32>
    %c127_i32 = arith.constant 127 : i32
    %3 = vector.broadcast %c127_i32 : i32 to vector<8x128xi32>
    %4 = arith.andi %0, %3 : vector<8x128xi32>
    %c-1_i32 = arith.constant -1 : i32
    %5 = vector.broadcast %c-1_i32 : i32 to vector<8x128xi32>
    %c0_1 = arith.constant 0 : index
    %c0_2 = arith.constant 0 : index
    %6 = vector.load %arg1[%c0_1, %c0_2] : memref<8x128xi32, #tpu.memory_space<vmem>>, vector<1x128xi32>
    %7 = vector.shape_cast %6 : vector<1x128xi32> to vector<1x128xi32>
    %8 = vector.broadcast %7 : vector<1x128xi32> to vector<8x128xi32>
    %c0_i32 = arith.constant 0 : i32
    %9 = vector.broadcast %c0_i32 : i32 to vector<8x128xi32>
    %10 = arith.cmpi slt, %4, %9 : vector<8x128xi32>
    %c128_i32 = arith.constant 128 : i32
    %11 = vector.broadcast %c128_i32 : i32 to vector<8x128xi32>
    %12 = arith.addi %4, %11 : vector<8x128xi32>
    %13 = arith.select %10, %12, %4 : vector<8x128xi1>, vector<8x128xi32>
    %14 = vector.shape_cast %13 : vector<8x128xi32> to vector<8x128x1xi32>
    %15 = vector.shape_cast %14 : vector<8x128x1xi32> to vector<8x128xi32>
    %16 = tpu.dynamic_gather %8[%15] in [1] : vector<8x128xi32>, vector<8x128xi32> -> vector<8x128xi32>
    %c0_i32_3 = arith.constant 0 : i32
    %17 = vector.broadcast %c0_i32_3 : i32 to vector<8x128xi32>
    %18 = arith.cmpi eq, %2, %17 : vector<8x128xi32>
    %19 = arith.select %18, %16, %5 : vector<8x128xi1>, vector<8x128xi32>
    %c0_4 = arith.constant 0 : index
    %c0_5 = arith.constant 0 : index
    %20 = vector.load %arg3[%c0_4, %c0_5] : memref<8x128xi32, #tpu.memory_space<vmem>>, vector<8x128xi32>
    tpu.vector_store %arg3[%c0_4, %c0_5], %19 {strides = array<i32>} : memref<8x128xi32, #tpu.memory_space<vmem>>, vector<8x128xi32>,
    return
  }
  func.func @transform_0(%arg0: i32) -> (i32, i32) {
    %c0_i32 = arith.constant 0 : i32
    %c0_i32_0 = arith.constant 0 : i32
    %c0_i32_1 = arith.constant 0 : i32
    return %c0_i32, %c0_i32_0 : i32, i32
  }
  func.func @transform_1(%arg0: i32) -> (i32, i32) {
    %c0_i32 = arith.constant 0 : i32
    %c0_i32_0 = arith.constant 0 : i32
    return %arg0, %c0_i32 : i32, i32
  }
  func.func @transform_2(%arg0: i32) -> (i32, i32) {
    %c0_i32 = arith.constant 0 : i32
    %c0_i32_0 = arith.constant 0 : i32
    return %arg0, %c0_i32 : i32, i32
  }
}

</mosaic_0001>

<bundles_post_ra>
// kernel: tpu_custom_call.1
= control target key start
LH: loop header
LB: loop body
LE: loop exit
PB: predicated region body
PF: predicated region fallthrough
CT: control target
= control target key end

     0   :  { %7 = vsyncpa [#allocation3], 0  ;;  %s200_s0 = inlined_call_operand.hbm [shape: s32[8,128], index: 0, kind: input, shape index: {}]   ;;  %s201_s1 = inlined_call_operand.hbm [shape: s32[8,128], index: 1, kind: input, shape index: {}]   ;;  %s202_s2 = inlined_call_operand.hbm [shape: s32[8,128], index: 2, kind: output, shape index: {}]  }
   0x1   :  { %8 = vsyncpa [#allocation6], 0 }
   0x2   :  { %9 = vsyncpa [#allocation4], 0  ;;  %s146_s9 = smov [#allocation2]   ;;  %s147_s11 = smov [#allocation5]  }
   0x3   :  { %s16_s10 = sshll.u32 %s146_s9, 4  ;;  %s26_s12 = sshll.u32 %s147_s11, 4  ;;  %s17_s10 = int_to_ptr.vmem [resolvable:$true] %s16_s10  ;;  %s27_s12 = int_to_ptr.vmem [resolvable:$true] %s26_s12 }
   0x4   :  { %s74_s15 = scalar_lea.hbm %s200_s0, 128 }
   0x5   :  { %p75_p0 = scmp.ne.s32.totalorder %s200_s0, %s74_s15  ;;  %p78_p1 = scmp.lt.u32.totalorder %s74_s15, %s200_s0 }
   0x7   :  { %p80_p2 = pnand %p78_p1, %p75_p0 }
   0x9   :  { %83 = shalt.err (!%p80_p2)
}
   0xa   :  { %s84_s20 = scalar_lea.vmem %s17_s10, 128  ;;  %p89_p4 = scmp.lt.s32.totalorder %s17_s10, %s17_s10 }
   0xb   :  { %p85_p3 = scmp.ne.s32.totalorder %s17_s10, %s84_s20  ;;  %p90_p5 = scmp.lt.s32.totalorder %s84_s20, %s84_s20 }
   0xd   :  { %p91_p6 = por %p90_p5, %p89_p4 }
   0xf   :  { %p92_p7 = pnand %p91_p6, %p85_p3 }
  0x11   :  { %95 = shalt.err (!%p92_p7)
}
  0x12   :  { %19 = dma.hbm_to_vmem [thread:$0]  %s200_s0, 128, %s17_s10, [#allocation3]  }
  0x13   :  { %s96_s25 = scalar_lea.hbm %s201_s1, 128 }
  0x14   :  { %p97_p8 = scmp.ne.s32.totalorder %s201_s1, %s96_s25  ;;  %p100_p9 = scmp.lt.u32.totalorder %s96_s25, %s201_s1 }
  0x16   :  { %p102_p10 = pnand %p100_p9, %p97_p8 }
  0x18   :  { %105 = shalt.err (!%p102_p10)
}
  0x19   :  { %s106_s30 = scalar_lea.vmem %s27_s12, 128  ;;  %p111_p12 = scmp.lt.s32.totalorder %s27_s12, %s27_s12 }
  0x1a   :  { %p107_p11 = scmp.ne.s32.totalorder %s27_s12, %s106_s30  ;;  %p112_p13 = scmp.lt.s32.totalorder %s106_s30, %s106_s30 }
  0x1c   :  { %p113_p0 = por %p112_p13, %p111_p12 }
  0x1e   :  { %p114_p1 = pnand %p113_p0, %p107_p11 }
  0x20   :  { %117 = shalt.err (!%p114_p1)
}
  0x21   :  { %29 = dma.hbm_to_vmem [thread:$0]  %s201_s1, 128, %s27_s12, [#allocation6]  }
  0x22   :  { %140 = dma.done.wait [#allocation3], 128  }
  0x23   :  { %141 = vsyncadd [#allocation3], 4294967168 }
  0x24   :  { %142 = dma.done.wait [#allocation6], 128  }
  0x25   :  { %143 = vsyncadd [#allocation6], 4294967168  ;;  %v36_v0 = vld [vmem:[#allocation5] sm:$0xff]  ;;  %v69_v4 = vld [vmem:[#allocation2] ss:$0 sm:$0xff]  ;;  %s148_s4 = smov [#allocation7]  }
  0x26   :  { %v38_v1 = vand.u32 127, %v36_v0  ;;  %v37_v5 = vshra.s32 %v36_v0, 7  ;;  %s59_s5 = sshll.u32 %s148_s4, 4  ;;  %s60_s5 = int_to_ptr.vmem [resolvable:$true] %s59_s5 }
  0x27   :  { %s118_s1 = scalar_lea.vmem %s60_s5, 128  ;;  %p123_p3 = scmp.lt.s32.totalorder %s60_s5, %s60_s5 }
  0x28   :  { %vm44_vm0 = vcmp.lt.s32.totalorder %v38_v1, 0  ;;  %v45_v2 = vadd.s32 128, %v38_v1  ;;  %vm50_vm1 = vcmp.eq.s32.totalorder %v37_v5, 0  ;;  %p119_p2 = scmp.ne.s32.totalorder %s60_s5, %s118_s1  ;;  %p124_p4 = scmp.lt.s32.totalorder %s118_s1, %s118_s1 }
  0x2a   :  { %v46_v3 = vsel %vm44_vm0, %v45_v2, %v38_v1  ;;  %p125_p5 = por %p124_p4, %p123_p3 }
  0x2b   :  { %73 = vset.pattern.permute.xlu0 %v46_v3 }
  0x2c   :  { %p126_p6 = pnand %p125_p5, %p119_p2 }
  0x2f   :  { %48 = vperm.xlu0 %73, %v69_v4  }
  0xae   :  { %v49_v6 = vpop.permute.xlu0 %48 }
  0xaf   :  { %v51_v7 = vsel %vm50_vm1, %v49_v6, 4294967295 }
  0xb0   :  { %52 = vst [vmem:[#allocation7] sm:$0xff] %v51_v7 }
  0xb1   :  { %129 = shalt.err (!%p126_p6)
}
  0xb2   :  { %s130_s8 = scalar_lea.hbm %s202_s2, 128 }
  0xb3   :  { %p131_p7 = scmp.ne.s32.totalorder %s202_s2, %s130_s8  ;;  %p134_p8 = scmp.lt.u32.totalorder %s130_s8, %s202_s2 }
  0xb5   :  { %p136_p9 = pnand %p134_p8, %p131_p7 }
  0xb7   :  { %139 = shalt.err (!%p136_p9)
}
  0xb8   :  { %62 = dma.vmem_to_hbm [thread:$0]  %s60_s5, 128, %s202_s2, [#allocation4]  }
  0xb9   :  { %144 = dma.done.wait [#allocation4], 128  }
  0xba   :  { %145 = vsyncadd [#allocation4], 4294967168 }
  0xbb   :  { %66 = vsyncpa [#allocation3], 1 }
  0xbc   :  { %67 = vsyncpa [#allocation6], 1 }
  0xbd   :  { %68 = vsyncpa [#allocation4], 1 }

</bundles_post_ra>
